<compile_context>
chip_gen: v6e
topology: v6e:2x2x1
jax: 0.10.0
libtpu: 0.0.40
codegen_flags: <defaults>
</compile_context>

<pallas_src>
import functools

import jax
import jax.numpy as jnp
from jax.experimental import pallas as pl
from jax.experimental.pallas import tpu as pltpu

LN_EPS = 1e-5      # torch.nn.LayerNorm default
LANE = 128         # TPU lane width (last dim)
SUBLANE = 8        # TPU sublane width (second-to-last dim)


def _round_up(n, m):
    return ((n + m - 1) // m) * m


def _silu(h):
    # logistic lowers to the EUP slot; keep f32 (v5e has no bf16 VPU/EUP path).
    return h * jax.nn.sigmoid(h)


def _masked_layernorm(h, gamma, beta, n_valid):
    """LayerNorm over the first `n_valid` lanes of h.

    Lanes >= n_valid hold exact zeros (zero-padded weight columns / biases),
    and gamma/beta are zero-padded there too, so padded lanes come out as 0.
    """
    mask = jax.lax.broadcasted_iota(jnp.int32, h.shape, 1) < n_valid
    inv_n = 1.0 / n_valid
    mu = jnp.sum(h, axis=-1, keepdims=True) * inv_n           # padded lanes are 0
    d = jnp.where(mask, h - mu, 0.0)
    var = jnp.sum(d * d, axis=-1, keepdims=True) * inv_n      # biased, like torch
    return (h - mu) * jax.lax.rsqrt(var + LN_EPS) * gamma + beta


def mlp_head_kernel(x_ref,
                    w1_ref, b1_ref, g1_ref, be1_ref,
                    w2_ref, b2_ref, g2_ref, be2_ref,
                    w3_ref, b3_ref,
                    o_ref, *, hidden_dim, mxu_dtype):
    # Linear 1 (bf16 operands on the MXU, f32 accumulate) + LayerNorm + SiLU.
    h = jnp.dot(x_ref[...], w1_ref[...],
                preferred_element_type=jnp.float32) + b1_ref[...]
    h = _silu(_masked_layernorm(h, g1_ref[...], be1_ref[...], hidden_dim))

    # Linear 2 + LayerNorm + SiLU.
    h = jnp.dot(h.astype(mxu_dtype), w2_ref[...],
                preferred_element_type=jnp.float32) + b2_ref[...]
    h = _silu(_masked_layernorm(h, g2_ref[...], be2_ref[...], hidden_dim))

    # Linear 3 (output projection) -> lane-dense (padded) output slab.
    y = jnp.dot(h.astype(mxu_dtype), w3_ref[...],
                preferred_element_type=jnp.float32) + b3_ref[...]
    o_ref[...] = y.astype(o_ref.dtype)


def _pad2(a, shape, dtype):
    if a.shape == shape and a.dtype == dtype:
        return a
    r, c = a.shape
    return jnp.zeros(shape, dtype).at[:r, :c].set(a.astype(dtype))


def _mlp_head_call(x, params, *, block_b, mxu_dtype, single_buffer_weights):
    B, in_dim = x.shape
    hidden_dim = params["w1"].shape[1]
    out_dim = params["w3"].shape[1]

    # Pad every feature axis to lane width; padded columns/rows are zero so the
    # math is unchanged and the padded output lanes are sliced away afterwards.
    in_p = _round_up(in_dim, LANE)
    hid_p = _round_up(hidden_dim, LANE)
    out_p = _round_up(out_dim, LANE)

    # Largest batch tile that covers the batch (capped at block_b). For tiny
    # batches this collapses the grid to one step; bigger batches get many
    # "parallel" steps (amortizes per-step overhead, feeds both v7x TCs).
    bb = min(block_b, _round_up(B, SUBLANE))
    B_p = _round_up(B, bb)
    grid = (B_p // bb,)

    # bf16 operands for the MXU; biases / LN affine stay f32 (applied after the
    # f32-accumulated matmul).
    x_p = _pad2(x, (B_p, in_p), mxu_dtype)
    w1 = _pad2(params["w1"], (in_p, hid_p), mxu_dtype)
    w2 = _pad2(params["w2"], (hid_p, hid_p), mxu_dtype)
    w3 = _pad2(params["w3"], (hid_p, out_p), mxu_dtype)
    b1 = _pad2(params["b1"], (1, hid_p), jnp.float32)
    g1 = _pad2(params["g1"], (1, hid_p), jnp.float32)
    be1 = _pad2(params["be1"], (1, hid_p), jnp.float32)
    b2 = _pad2(params["b2"], (1, hid_p), jnp.float32)
    g2 = _pad2(params["g2"], (1, hid_p), jnp.float32)
    be2 = _pad2(params["be2"], (1, hid_p), jnp.float32)
    b3 = _pad2(params["b3"], (1, out_p), jnp.float32)

    # Grid-invariant operands: constant index_map, so double-buffering them is
    # pure VMEM waste. Single-buffer when the runtime supports pl.Buffered(1).
    w_kwargs = {}
    if single_buffer_weights:
        w_kwargs["pipeline_mode"] = pl.Buffered(1)

    def const_spec(shape):
        return pl.BlockSpec(shape, lambda i: (0, 0), **w_kwargs)

    in_specs = [
        pl.BlockSpec((bb, in_p), lambda i: (i, 0)),   # x batch tile
        const_spec((in_p, hid_p)),                    # w1
        const_spec((1, hid_p)),                       # b1
        const_spec((1, hid_p)),                       # ln1 gamma
        const_spec((1, hid_p)),                       # ln1 beta
        const_spec((hid_p, hid_p)),                   # w2
        const_spec((1, hid_p)),                       # b2
        const_spec((1, hid_p)),                       # ln2 gamma
        const_spec((1, hid_p)),                       # ln2 beta
        const_spec((hid_p, out_p)),                   # w3
        const_spec((1, out_p)),                       # b3
    ]
    # Lane-dense output slab (out_p is a multiple of 128) -> unmasked vst.
    out_specs = pl.BlockSpec((bb, out_p), lambda i: (i, 0))

    kernel = functools.partial(mlp_head_kernel, hidden_dim=hidden_dim,
                               mxu_dtype=mxu_dtype)

    out_padded = pl.pallas_call(
        kernel,
        out_shape=jax.ShapeDtypeStruct((B_p, out_p), x.dtype),
        grid_spec=pl.GridSpec(grid=grid, in_specs=in_specs, out_specs=out_specs),
        compiler_params=pltpu.CompilerParams(
            dimension_semantics=("parallel",),
            vmem_limit_bytes=64 * 1024 * 1024,
        ),
    )(x_p, w1, b1, g1, be1, w2, b2, g2, be2, w3, b3)

    return out_padded[:B, :out_dim]


def mlp_head(x, params, *, block_b=256, mxu_dtype=jnp.bfloat16):
    """x: (B, in_dim). params: dict of weights (see init_params)."""
    try:
        return _mlp_head_call(x, params, block_b=block_b, mxu_dtype=mxu_dtype,
                              single_buffer_weights=True)
    except Exception:
        # Some JAX/Mosaic versions don't support single-buffered pipeline blocks;
        # the double-buffered fallback is identical apart from weight VMEM use.
        return _mlp_head_call(x, params, block_b=block_b, mxu_dtype=mxu_dtype,
                              single_buffer_weights=False)


def init_params(key, in_dim, hidden_dim, out_dim, w_dim=0):
    """Deterministic synthetic init mirroring MLPHead.__init__ shapes.

    Weights are stored as (fan_in, fan_out), i.e. the transpose of
    torch.nn.Linear.weight, so the kernel computes x @ W + b directly.
    """
    in_dim = in_dim + w_dim
    ks = jax.random.split(key, 6)
    s1 = 1.0 / jnp.sqrt(in_dim)
    s2 = 1.0 / jnp.sqrt(hidden_dim)
    return {
        "w1": jax.random.uniform(ks[0], (in_dim, hidden_dim), jnp.float32, -s1, s1),
        "b1": jax.random.uniform(ks[1], (1, hidden_dim), jnp.float32, -s1, s1),
        "g1": jnp.ones((1, hidden_dim), jnp.float32),
        "be1": jnp.zeros((1, hidden_dim), jnp.float32),
        "w2": jax.random.uniform(ks[2], (hidden_dim, hidden_dim), jnp.float32, -s2, s2),
        "b2": jax.random.uniform(ks[3], (1, hidden_dim), jnp.float32, -s2, s2),
        "g2": jnp.ones((1, hidden_dim), jnp.float32),
        "be2": jnp.zeros((1, hidden_dim), jnp.float32),
        "w3": jax.random.uniform(ks[4], (hidden_dim, out_dim), jnp.float32, -s2, s2),
        "b3": jax.random.uniform(ks[5], (1, out_dim), jnp.float32, -s2, s2),
    }


def _layernorm_ref(h, gamma, beta):
    mu = jnp.mean(h, axis=-1, keepdims=True)
    var = jnp.mean((h - mu) ** 2, axis=-1, keepdims=True)
    return (h - mu) * jax.lax.rsqrt(var + LN_EPS) * gamma + beta


def mlp_head_ref(x, p, mxu_dtype=jnp.float32):
    """Pure-JAX reference matching the PyTorch forward. mxu_dtype=bfloat16
    mirrors the kernel's matmul-operand quantization (f32 accumulation)."""
    def mm(a, w):
        return jnp.dot(a.astype(mxu_dtype), w.astype(mxu_dtype),
                       preferred_element_type=jnp.float32)
    h = mm(x, p["w1"]) + p["b1"]
    h = _silu(_layernorm_ref(h, p["g1"], p["be1"]))
    h = mm(h, p["w2"]) + p["b2"]
    h = _silu(_layernorm_ref(h, p["g2"], p["be2"]))
    return mm(h, p["w3"]) + p["b3"]


if __name__ == "__main__":
    key = jax.random.PRNGKey(0)
    k_param, k_x = jax.random.split(key)

    # Small shapes consistent with the module: batch=8, in_dim=16, w_dim=4,
    # hidden_dim=32, out_dim=8.
    in_dim, hidden_dim, out_dim, w_dim = 16, 32, 8, 4
    batch = 8

    params = init_params(k_param, in_dim, hidden_dim, out_dim, w_dim=w_dim)
    x = jax.random.normal(k_x, (batch, in_dim + w_dim), jnp.float32)

    out = jax.block_until_ready(mlp_head(x, params))
    assert out.shape == (batch, out_dim)

    # Tight check vs. a reference that applies the same bf16 operand
    # quantization (f32 accumulation, f32 LayerNorm/SiLU).
    ref_bf16 = mlp_head_ref(x, params, mxu_dtype=jnp.bfloat16)
    assert jnp.allclose(out, ref_bf16, atol=5e-3, rtol=5e-3), (
        float(jnp.max(jnp.abs(out - ref_bf16))))

    # Looser check vs. the pure-f32 PyTorch semantics.
    ref_f32 = mlp_head_ref(x, params, mxu_dtype=jnp.float32)
    assert jnp.allclose(out, ref_f32, atol=0.1, rtol=0.1), (
        float(jnp.max(jnp.abs(out - ref_f32))))

    print("KERNEL_OK")
</pallas_src>

<mosaic_0001>
module attributes {stable_mosaic.version = 11 : i64} {
  func.func @mlp_head_kernel(%arg0: i32, %arg1: memref<8x128xbf16, #tpu.memory_space<vmem>>, %arg2: memref<128x128xbf16, #tpu.memory_space<vmem>>, %arg3: memref<1x128xf32, #tpu.memory_space<vmem>>, %arg4: memref<1x128xf32, #tpu.memory_space<vmem>>, %arg5: memref<1x128xf32, #tpu.memory_space<vmem>>, %arg6: memref<128x128xbf16, #tpu.memory_space<vmem>>, %arg7: memref<1x128xf32, #tpu.memory_space<vmem>>, %arg8: memref<1x128xf32, #tpu.memory_space<vmem>>, %arg9: memref<1x128xf32, #tpu.memory_space<vmem>>, %arg10: memref<128x128xbf16, #tpu.memory_space<vmem>>, %arg11: memref<1x128xf32, #tpu.memory_space<vmem>>, %arg12: memref<8x128xf32, #tpu.memory_space<vmem>>) attributes {dimension_semantics = [#tpu.dimension_semantics<parallel>], iteration_bounds = array<i64: 1>, scalar_prefetch = 0 : i64, scratch_operands = 0 : i64, tpu.core_type = #tpu.core_type<tc>, window_params = [{transform_indices = @transform_0, window_bounds = array<i64: 8, 128>}, {pipeline_mode = #tpu.pipeline_mode<synchronous>, transform_indices = @transform_1, window_bounds = array<i64: 128, 128>}, {pipeline_mode = #tpu.pipeline_mode<synchronous>, transform_indices = @transform_2, window_bounds = array<i64: 1, 128>}, {pipeline_mode = #tpu.pipeline_mode<synchronous>, transform_indices = @transform_3, window_bounds = array<i64: 1, 128>}, {pipeline_mode = #tpu.pipeline_mode<synchronous>, transform_indices = @transform_4, window_bounds = array<i64: 1, 128>}, {pipeline_mode = #tpu.pipeline_mode<synchronous>, transform_indices = @transform_5, window_bounds = array<i64: 128, 128>}, {pipeline_mode = #tpu.pipeline_mode<synchronous>, transform_indices = @transform_6, window_bounds = array<i64: 1, 128>}, {pipeline_mode = #tpu.pipeline_mode<synchronous>, transform_indices = @transform_7, window_bounds = array<i64: 1, 128>}, {pipeline_mode = #tpu.pipeline_mode<synchronous>, transform_indices = @transform_8, window_bounds = array<i64: 1, 128>}, {pipeline_mode = #tpu.pipeline_mode<synchronous>, transform_indices = @transform_9, window_bounds = array<i64: 128, 128>}, {pipeline_mode = #tpu.pipeline_mode<synchronous>, transform_indices = @transform_10, window_bounds = array<i64: 1, 128>}, {transform_indices = @transform_11, window_bounds = array<i64: 8, 128>}]} {
    %c0 = arith.constant 0 : index
    %c0_0 = arith.constant 0 : index
    %0 = vector.load %arg1[%c0, %c0_0] : memref<8x128xbf16, #tpu.memory_space<vmem>>, vector<8x128xbf16>
    %c0_1 = arith.constant 0 : index
    %c0_2 = arith.constant 0 : index
    %1 = vector.load %arg2[%c0_1, %c0_2] : memref<128x128xbf16, #tpu.memory_space<vmem>>, vector<128x128xbf16>
    %cst = arith.constant dense<0.000000e+00> : vector<8x128xf32>
    %2 = tpu.matmul %0, %1, %cst {dimension_numbers = #tpu.dot_dimension_numbers<[1], [0], [0], [1], [0, 0, 1, 1], [], []>} : vector<8x128xbf16>, vector<128x128xbf16>, vector<8x128xf32> -> vector<8x128xf32>
    %c0_3 = arith.constant 0 : index
    %c0_4 = arith.constant 0 : index
    %3 = vector.load %arg3[%c0_3, %c0_4] : memref<1x128xf32, #tpu.memory_space<vmem>>, vector<1x128xf32>
    %4 = vector.broadcast %3 : vector<1x128xf32> to vector<8x128xf32>
    %5 = arith.addf %2, %4 : vector<8x128xf32>
    %c0_5 = arith.constant 0 : index
    %c0_6 = arith.constant 0 : index
    %6 = vector.load %arg4[%c0_5, %c0_6] : memref<1x128xf32, #tpu.memory_space<vmem>>, vector<1x128xf32>
    %c0_7 = arith.constant 0 : index
    %c0_8 = arith.constant 0 : index
    %7 = vector.load %arg5[%c0_7, %c0_8] : memref<1x128xf32, #tpu.memory_space<vmem>>, vector<1x128xf32>
    %8 = tpu.iota {dimensions = array<i32: 1>} : vector<8x128xi32>
    %c32_i32 = arith.constant 32 : i32
    %9 = vector.broadcast %c32_i32 : i32 to vector<8x128xi32>
    %10 = arith.cmpi slt, %8, %9 : vector<8x128xi32>
    %cst_9 = arith.constant dense<0.000000e+00> : vector<8xf32>
    %11 = vector.multi_reduction <add>, %5, %cst_9 [1] : vector<8x128xf32> to vector<8xf32>
    %12 = vector.shape_cast %11 : vector<8xf32> to vector<8x1xf32>
    %cst_10 = arith.constant 3.125000e-02 : f32
    %13 = vector.broadcast %cst_10 : f32 to vector<8x1xf32>
    %14 = arith.mulf %12, %13 : vector<8x1xf32>
    %15 = vector.broadcast %14 : vector<8x1xf32> to vector<8x128xf32>
    %16 = arith.subf %5, %15 : vector<8x128xf32>
    %cst_11 = arith.constant 0.000000e+00 : f32
    %17 = vector.broadcast %cst_11 : f32 to vector<8x128xf32>
    %18 = arith.select %10, %16, %17 : vector<8x128xi1>, vector<8x128xf32>
    %19 = arith.mulf %18, %18 : vector<8x128xf32>
    %cst_12 = arith.constant dense<0.000000e+00> : vector<8xf32>
    %20 = vector.multi_reduction <add>, %19, %cst_12 [1] : vector<8x128xf32> to vector<8xf32>
    %21 = vector.shape_cast %20 : vector<8xf32> to vector<8x1xf32>
    %cst_13 = arith.constant 3.125000e-02 : f32
    %22 = vector.broadcast %cst_13 : f32 to vector<8x1xf32>
    %23 = arith.mulf %21, %22 : vector<8x1xf32>
    %24 = vector.broadcast %14 : vector<8x1xf32> to vector<8x128xf32>
    %25 = arith.subf %5, %24 : vector<8x128xf32>
    %cst_14 = arith.constant 9.99999974E-6 : f32
    %26 = vector.broadcast %cst_14 : f32 to vector<8x1xf32>
    %27 = arith.addf %23, %26 : vector<8x1xf32>
    %28 = math.rsqrt %27 : vector<8x1xf32>
    %29 = vector.broadcast %28 : vector<8x1xf32> to vector<8x128xf32>
    %30 = arith.mulf %25, %29 : vector<8x128xf32>
    %31 = vector.broadcast %6 : vector<1x128xf32> to vector<8x128xf32>
    %32 = arith.mulf %30, %31 : vector<8x128xf32>
    %33 = vector.broadcast %7 : vector<1x128xf32> to vector<8x128xf32>
    %34 = arith.addf %32, %33 : vector<8x128xf32>
    %35 = arith.negf %34 : vector<8x128xf32>
    %36 = math.exp %35 : vector<8x128xf32>
    %cst_15 = arith.constant 1.000000e+00 : f32
    %37 = vector.broadcast %cst_15 : f32 to vector<8x128xf32>
    %38 = arith.addf %37, %36 : vector<8x128xf32>
    %39 = arith.divf %37, %38 : vector<8x128xf32>
    %40 = arith.mulf %34, %39 : vector<8x128xf32>
    %41 = arith.truncf %40 : vector<8x128xf32> to vector<8x128xbf16>
    %c0_16 = arith.constant 0 : index
    %c0_17 = arith.constant 0 : index
    %42 = vector.load %arg6[%c0_16, %c0_17] : memref<128x128xbf16, #tpu.memory_space<vmem>>, vector<128x128xbf16>
    %cst_18 = arith.constant dense<0.000000e+00> : vector<8x128xf32>
    %43 = tpu.matmul %41, %42, %cst_18 {dimension_numbers = #tpu.dot_dimension_numbers<[1], [0], [0], [1], [0, 0, 1, 1], [], []>} : vector<8x128xbf16>, vector<128x128xbf16>, vector<8x128xf32> -> vector<8x128xf32>
    %c0_19 = arith.constant 0 : index
    %c0_20 = arith.constant 0 : index
    %44 = vector.load %arg7[%c0_19, %c0_20] : memref<1x128xf32, #tpu.memory_space<vmem>>, vector<1x128xf32>
    %45 = vector.broadcast %44 : vector<1x128xf32> to vector<8x128xf32>
    %46 = arith.addf %43, %45 : vector<8x128xf32>
    %c0_21 = arith.constant 0 : index
    %c0_22 = arith.constant 0 : index
    %47 = vector.load %arg8[%c0_21, %c0_22] : memref<1x128xf32, #tpu.memory_space<vmem>>, vector<1x128xf32>
    %c0_23 = arith.constant 0 : index
    %c0_24 = arith.constant 0 : index
    %48 = vector.load %arg9[%c0_23, %c0_24] : memref<1x128xf32, #tpu.memory_space<vmem>>, vector<1x128xf32>
    %49 = tpu.iota {dimensions = array<i32: 1>} : vector<8x128xi32>
    %c32_i32_25 = arith.constant 32 : i32
    %50 = vector.broadcast %c32_i32_25 : i32 to vector<8x128xi32>
    %51 = arith.cmpi slt, %49, %50 : vector<8x128xi32>
    %cst_26 = arith.constant dense<0.000000e+00> : vector<8xf32>
    %52 = vector.multi_reduction <add>, %46, %cst_26 [1] : vector<8x128xf32> to vector<8xf32>
    %53 = vector.shape_cast %52 : vector<8xf32> to vector<8x1xf32>
    %cst_27 = arith.constant 3.125000e-02 : f32
    %54 = vector.broadcast %cst_27 : f32 to vector<8x1xf32>
    %55 = arith.mulf %53, %54 : vector<8x1xf32>
    %56 = vector.broadcast %55 : vector<8x1xf32> to vector<8x128xf32>
    %57 = arith.subf %46, %56 : vector<8x128xf32>
    %cst_28 = arith.constant 0.000000e+00 : f32
    %58 = vector.broadcast %cst_28 : f32 to vector<8x128xf32>
    %59 = arith.select %51, %57, %58 : vector<8x128xi1>, vector<8x128xf32>
    %60 = arith.mulf %59, %59 : vector<8x128xf32>
    %cst_29 = arith.constant dense<0.000000e+00> : vector<8xf32>
    %61 = vector.multi_reduction <add>, %60, %cst_29 [1] : vector<8x128xf32> to vector<8xf32>
    %62 = vector.shape_cast %61 : vector<8xf32> to vector<8x1xf32>
    %cst_30 = arith.constant 3.125000e-02 : f32
    %63 = vector.broadcast %cst_30 : f32 to vector<8x1xf32>
    %64 = arith.mulf %62, %63 : vector<8x1xf32>
    %65 = vector.broadcast %55 : vector<8x1xf32> to vector<8x128xf32>
    %66 = arith.subf %46, %65 : vector<8x128xf32>
    %cst_31 = arith.constant 9.99999974E-6 : f32
    %67 = vector.broadcast %cst_31 : f32 to vector<8x1xf32>
    %68 = arith.addf %64, %67 : vector<8x1xf32>
    %69 = math.rsqrt %68 : vector<8x1xf32>
    %70 = vector.broadcast %69 : vector<8x1xf32> to vector<8x128xf32>
    %71 = arith.mulf %66, %70 : vector<8x128xf32>
    %72 = vector.broadcast %47 : vector<1x128xf32> to vector<8x128xf32>
    %73 = arith.mulf %71, %72 : vector<8x128xf32>
    %74 = vector.broadcast %48 : vector<1x128xf32> to vector<8x128xf32>
    %75 = arith.addf %73, %74 : vector<8x128xf32>
    %76 = arith.negf %75 : vector<8x128xf32>
    %77 = math.exp %76 : vector<8x128xf32>
    %cst_32 = arith.constant 1.000000e+00 : f32
    %78 = vector.broadcast %cst_32 : f32 to vector<8x128xf32>
    %79 = arith.addf %78, %77 : vector<8x128xf32>
    %80 = arith.divf %78, %79 : vector<8x128xf32>
    %81 = arith.mulf %75, %80 : vector<8x128xf32>
    %82 = arith.truncf %81 : vector<8x128xf32> to vector<8x128xbf16>
    %c0_33 = arith.constant 0 : index
    %c0_34 = arith.constant 0 : index
    %83 = vector.load %arg10[%c0_33, %c0_34] : memref<128x128xbf16, #tpu.memory_space<vmem>>, vector<128x128xbf16>
    %cst_35 = arith.constant dense<0.000000e+00> : vector<8x128xf32>
    %84 = tpu.matmul %82, %83, %cst_35 {dimension_numbers = #tpu.dot_dimension_numbers<[1], [0], [0], [1], [0, 0, 1, 1], [], []>} : vector<8x128xbf16>, vector<128x128xbf16>, vector<8x128xf32> -> vector<8x128xf32>
    %c0_36 = arith.constant 0 : index
    %c0_37 = arith.constant 0 : index
    %85 = vector.load %arg11[%c0_36, %c0_37] : memref<1x128xf32, #tpu.memory_space<vmem>>, vector<1x128xf32>
    %86 = vector.broadcast %85 : vector<1x128xf32> to vector<8x128xf32>
    %87 = arith.addf %84, %86 : vector<8x128xf32>
    %c0_38 = arith.constant 0 : index
    %c0_39 = arith.constant 0 : index
    %88 = vector.load %arg12[%c0_38, %c0_39] : memref<8x128xf32, #tpu.memory_space<vmem>>, vector<8x128xf32>
    tpu.vector_store %arg12[%c0_38, %c0_39], %87 {strides = array<i32>} : memref<8x128xf32, #tpu.memory_space<vmem>>, vector<8x128xf32>,
    return
  }
  func.func @transform_0(%arg0: i32) -> (i32, i32) {
    %c0_i32 = arith.constant 0 : i32
    %c0_i32_0 = arith.constant 0 : i32
    return %arg0, %c0_i32 : i32, i32
  }
  func.func @transform_1(%arg0: i32) -> (i32, i32) {
    %c0_i32 = arith.constant 0 : i32
    %c0_i32_0 = arith.constant 0 : i32
    %c0_i32_1 = arith.constant 0 : i32
    return %c0_i32, %c0_i32_0 : i32, i32
  }
  func.func @transform_2(%arg0: i32) -> (i32, i32) {
    %c0_i32 = arith.constant 0 : i32
    %c0_i32_0 = arith.constant 0 : i32
    %c0_i32_1 = arith.constant 0 : i32
    return %c0_i32, %c0_i32_0 : i32, i32
  }
  func.func @transform_3(%arg0: i32) -> (i32, i32) {
    %c0_i32 = arith.constant 0 : i32
    %c0_i32_0 = arith.constant 0 : i32
    %c0_i32_1 = arith.constant 0 : i32
    return %c0_i32, %c0_i32_0 : i32, i32
  }
  func.func @transform_4(%arg0: i32) -> (i32, i32) {
    %c0_i32 = arith.constant 0 : i32
    %c0_i32_0 = arith.constant 0 : i32
    %c0_i32_1 = arith.constant 0 : i32
    return %c0_i32, %c0_i32_0 : i32, i32
  }
  func.func @transform_5(%arg0: i32) -> (i32, i32) {
    %c0_i32 = arith.constant 0 : i32
    %c0_i32_0 = arith.constant 0 : i32
    %c0_i32_1 = arith.constant 0 : i32
    return %c0_i32, %c0_i32_0 : i32, i32
  }
  func.func @transform_6(%arg0: i32) -> (i32, i32) {
    %c0_i32 = arith.constant 0 : i32
    %c0_i32_0 = arith.constant 0 : i32
    %c0_i32_1 = arith.constant 0 : i32
    return %c0_i32, %c0_i32_0 : i32, i32
  }
  func.func @transform_7(%arg0: i32) -> (i32, i32) {
    %c0_i32 = arith.constant 0 : i32
    %c0_i32_0 = arith.constant 0 : i32
    %c0_i32_1 = arith.constant 0 : i32
    return %c0_i32, %c0_i32_0 : i32, i32
  }
  func.func @transform_8(%arg0: i32) -> (i32, i32) {
    %c0_i32 = arith.constant 0 : i32
    %c0_i32_0 = arith.constant 0 : i32
    %c0_i32_1 = arith.constant 0 : i32
    return %c0_i32, %c0_i32_0 : i32, i32
  }
  func.func @transform_9(%arg0: i32) -> (i32, i32) {
    %c0_i32 = arith.constant 0 : i32
    %c0_i32_0 = arith.constant 0 : i32
    %c0_i32_1 = arith.constant 0 : i32
    return %c0_i32, %c0_i32_0 : i32, i32
  }
  func.func @transform_10(%arg0: i32) -> (i32, i32) {
    %c0_i32 = arith.constant 0 : i32
    %c0_i32_0 = arith.constant 0 : i32
    %c0_i32_1 = arith.constant 0 : i32
    return %c0_i32, %c0_i32_0 : i32, i32
  }
  func.func @transform_11(%arg0: i32) -> (i32, i32) {
    %c0_i32 = arith.constant 0 : i32
    %c0_i32_0 = arith.constant 0 : i32
    return %arg0, %c0_i32 : i32, i32
  }
}

module attributes {stable_mosaic.version = 11 : i64} {
  func.func @mlp_head_kernel(%arg0: i32, %arg1: memref<8x128xbf16, #tpu.memory_space<vmem>>, %arg2: memref<128x128xbf16, #tpu.memory_space<vmem>>, %arg3: memref<1x128xf32, #tpu.memory_space<vmem>>, %arg4: memref<1x128xf32, #tpu.memory_space<vmem>>, %arg5: memref<1x128xf32, #tpu.memory_space<vmem>>, %arg6: memref<128x128xbf16, #tpu.memory_space<vmem>>, %arg7: memref<1x128xf32, #tpu.memory_space<vmem>>, %arg8: memref<1x128xf32, #tpu.memory_space<vmem>>, %arg9: memref<1x128xf32, #tpu.memory_space<vmem>>, %arg10: memref<128x128xbf16, #tpu.memory_space<vmem>>, %arg11: memref<1x128xf32, #tpu.memory_space<vmem>>, %arg12: memref<8x128xf32, #tpu.memory_space<vmem>>) attributes {dimension_semantics = [#tpu.dimension_semantics<parallel>], iteration_bounds = array<i64: 1>, scalar_prefetch = 0 : i64, scratch_operands = 0 : i64, tpu.core_type = #tpu.core_type<tc>, window_params = [{transform_indices = @transform_0, window_bounds = array<i64: 8, 128>}, {pipeline_mode = #tpu.pipeline_mode<synchronous>, transform_indices = @transform_1, window_bounds = array<i64: 128, 128>}, {pipeline_mode = #tpu.pipeline_mode<synchronous>, transform_indices = @transform_2, window_bounds = array<i64: 1, 128>}, {pipeline_mode = #tpu.pipeline_mode<synchronous>, transform_indices = @transform_3, window_bounds = array<i64: 1, 128>}, {pipeline_mode = #tpu.pipeline_mode<synchronous>, transform_indices = @transform_4, window_bounds = array<i64: 1, 128>}, {pipeline_mode = #tpu.pipeline_mode<synchronous>, transform_indices = @transform_5, window_bounds = array<i64: 128, 128>}, {pipeline_mode = #tpu.pipeline_mode<synchronous>, transform_indices = @transform_6, window_bounds = array<i64: 1, 128>}, {pipeline_mode = #tpu.pipeline_mode<synchronous>, transform_indices = @transform_7, window_bounds = array<i64: 1, 128>}, {pipeline_mode = #tpu.pipeline_mode<synchronous>, transform_indices = @transform_8, window_bounds = array<i64: 1, 128>}, {pipeline_mode = #tpu.pipeline_mode<synchronous>, transform_indices = @transform_9, window_bounds = array<i64: 128, 128>}, {pipeline_mode = #tpu.pipeline_mode<synchronous>, transform_indices = @transform_10, window_bounds = array<i64: 1, 128>}, {transform_indices = @transform_11, window_bounds = array<i64: 8, 128>}]} {
    %c0 = arith.constant 0 : index
    %c0_0 = arith.constant 0 : index
    %0 = vector.load %arg1[%c0, %c0_0] : memref<8x128xbf16, #tpu.memory_space<vmem>>, vector<8x128xbf16>
    %c0_1 = arith.constant 0 : index
    %c0_2 = arith.constant 0 : index
    %1 = vector.load %arg2[%c0_1, %c0_2] : memref<128x128xbf16, #tpu.memory_space<vmem>>, vector<128x128xbf16>
    %cst = arith.constant dense<0.000000e+00> : vector<8x128xf32>
    %2 = tpu.matmul %0, %1, %cst {dimension_numbers = #tpu.dot_dimension_numbers<[1], [0], [0], [1], [0, 0, 1, 1], [], []>} : vector<8x128xbf16>, vector<128x128xbf16>, vector<8x128xf32> -> vector<8x128xf32>
    %c0_3 = arith.constant 0 : index
    %c0_4 = arith.constant 0 : index
    %3 = vector.load %arg3[%c0_3, %c0_4] : memref<1x128xf32, #tpu.memory_space<vmem>>, vector<1x128xf32>
    %4 = vector.broadcast %3 : vector<1x128xf32> to vector<8x128xf32>
    %5 = arith.addf %2, %4 : vector<8x128xf32>
    %c0_5 = arith.constant 0 : index
    %c0_6 = arith.constant 0 : index
    %6 = vector.load %arg4[%c0_5, %c0_6] : memref<1x128xf32, #tpu.memory_space<vmem>>, vector<1x128xf32>
    %c0_7 = arith.constant 0 : index
    %c0_8 = arith.constant 0 : index
    %7 = vector.load %arg5[%c0_7, %c0_8] : memref<1x128xf32, #tpu.memory_space<vmem>>, vector<1x128xf32>
    %8 = tpu.iota {dimensions = array<i32: 1>} : vector<8x128xi32>
    %c32_i32 = arith.constant 32 : i32
    %9 = vector.broadcast %c32_i32 : i32 to vector<8x128xi32>
    %10 = arith.cmpi slt, %8, %9 : vector<8x128xi32>
    %cst_9 = arith.constant dense<0.000000e+00> : vector<8xf32>
    %11 = vector.multi_reduction <add>, %5, %cst_9 [1] : vector<8x128xf32> to vector<8xf32>
    %12 = vector.shape_cast %11 : vector<8xf32> to vector<8x1xf32>
    %cst_10 = arith.constant 3.125000e-02 : f32
    %13 = vector.broadcast %cst_10 : f32 to vector<8x1xf32>
    %14 = arith.mulf %12, %13 : vector<8x1xf32>
    %15 = vector.broadcast %14 : vector<8x1xf32> to vector<8x128xf32>
    %16 = arith.subf %5, %15 : vector<8x128xf32>
    %cst_11 = arith.constant 0.000000e+00 : f32
    %17 = vector.broadcast %cst_11 : f32 to vector<8x128xf32>
    %18 = arith.select %10, %16, %17 : vector<8x128xi1>, vector<8x128xf32>
    %19 = arith.mulf %18, %18 : vector<8x128xf32>
    %cst_12 = arith.constant dense<0.000000e+00> : vector<8xf32>
    %20 = vector.multi_reduction <add>, %19, %cst_12 [1] : vector<8x128xf32> to vector<8xf32>
    %21 = vector.shape_cast %20 : vector<8xf32> to vector<8x1xf32>
    %cst_13 = arith.constant 3.125000e-02 : f32
    %22 = vector.broadcast %cst_13 : f32 to vector<8x1xf32>
    %23 = arith.mulf %21, %22 : vector<8x1xf32>
    %24 = vector.broadcast %14 : vector<8x1xf32> to vector<8x128xf32>
    %25 = arith.subf %5, %24 : vector<8x128xf32>
    %cst_14 = arith.constant 9.99999974E-6 : f32
    %26 = vector.broadcast %cst_14 : f32 to vector<8x1xf32>
    %27 = arith.addf %23, %26 : vector<8x1xf32>
    %28 = math.rsqrt %27 : vector<8x1xf32>
    %29 = vector.broadcast %28 : vector<8x1xf32> to vector<8x128xf32>
    %30 = arith.mulf %25, %29 : vector<8x128xf32>
    %31 = vector.broadcast %6 : vector<1x128xf32> to vector<8x128xf32>
    %32 = arith.mulf %30, %31 : vector<8x128xf32>
    %33 = vector.broadcast %7 : vector<1x128xf32> to vector<8x128xf32>
    %34 = arith.addf %32, %33 : vector<8x128xf32>
    %35 = arith.negf %34 : vector<8x128xf32>
    %36 = math.exp %35 : vector<8x128xf32>
    %cst_15 = arith.constant 1.000000e+00 : f32
    %37 = vector.broadcast %cst_15 : f32 to vector<8x128xf32>
    %38 = arith.addf %37, %36 : vector<8x128xf32>
    %39 = arith.divf %37, %38 : vector<8x128xf32>
    %40 = arith.mulf %34, %39 : vector<8x128xf32>
    %41 = arith.truncf %40 : vector<8x128xf32> to vector<8x128xbf16>
    %c0_16 = arith.constant 0 : index
    %c0_17 = arith.constant 0 : index
    %42 = vector.load %arg6[%c0_16, %c0_17] : memref<128x128xbf16, #tpu.memory_space<vmem>>, vector<128x128xbf16>
    %cst_18 = arith.constant dense<0.000000e+00> : vector<8x128xf32>
    %43 = tpu.matmul %41, %42, %cst_18 {dimension_numbers = #tpu.dot_dimension_numbers<[1], [0], [0], [1], [0, 0, 1, 1], [], []>} : vector<8x128xbf16>, vector<128x128xbf16>, vector<8x128xf32> -> vector<8x128xf32>
    %c0_19 = arith.constant 0 : index
    %c0_20 = arith.constant 0 : index
    %44 = vector.load %arg7[%c0_19, %c0_20] : memref<1x128xf32, #tpu.memory_space<vmem>>, vector<1x128xf32>
    %45 = vector.broadcast %44 : vector<1x128xf32> to vector<8x128xf32>
    %46 = arith.addf %43, %45 : vector<8x128xf32>
    %c0_21 = arith.constant 0 : index
    %c0_22 = arith.constant 0 : index
    %47 = vector.load %arg8[%c0_21, %c0_22] : memref<1x128xf32, #tpu.memory_space<vmem>>, vector<1x128xf32>
    %c0_23 = arith.constant 0 : index
    %c0_24 = arith.constant 0 : index
    %48 = vector.load %arg9[%c0_23, %c0_24] : memref<1x128xf32, #tpu.memory_space<vmem>>, vector<1x128xf32>
    %49 = tpu.iota {dimensions = array<i32: 1>} : vector<8x128xi32>
    %c32_i32_25 = arith.constant 32 : i32
    %50 = vector.broadcast %c32_i32_25 : i32 to vector<8x128xi32>
    %51 = arith.cmpi slt, %49, %50 : vector<8x128xi32>
    %cst_26 = arith.constant dense<0.000000e+00> : vector<8xf32>
    %52 = vector.multi_reduction <add>, %46, %cst_26 [1] : vector<8x128xf32> to vector<8xf32>
    %53 = vector.shape_cast %52 : vector<8xf32> to vector<8x1xf32>
    %cst_27 = arith.constant 3.125000e-02 : f32
    %54 = vector.broadcast %cst_27 : f32 to vector<8x1xf32>
    %55 = arith.mulf %53, %54 : vector<8x1xf32>
    %56 = vector.broadcast %55 : vector<8x1xf32> to vector<8x128xf32>
    %57 = arith.subf %46, %56 : vector<8x128xf32>
    %cst_28 = arith.constant 0.000000e+00 : f32
    %58 = vector.broadcast %cst_28 : f32 to vector<8x128xf32>
    %59 = arith.select %51, %57, %58 : vector<8x128xi1>, vector<8x128xf32>
    %60 = arith.mulf %59, %59 : vector<8x128xf32>
    %cst_29 = arith.constant dense<0.000000e+00> : vector<8xf32>
    %61 = vector.multi_reduction <add>, %60, %cst_29 [1] : vector<8x128xf32> to vector<8xf32>
    %62 = vector.shape_cast %61 : vector<8xf32> to vector<8x1xf32>
    %cst_30 = arith.constant 3.125000e-02 : f32
    %63 = vector.broadcast %cst_30 : f32 to vector<8x1xf32>
    %64 = arith.mulf %62, %63 : vector<8x1xf32>
    %65 = vector.broadcast %55 : vector<8x1xf32> to vector<8x128xf32>
    %66 = arith.subf %46, %65 : vector<8x128xf32>
    %cst_31 = arith.constant 9.99999974E-6 : f32
    %67 = vector.broadcast %cst_31 : f32 to vector<8x1xf32>
    %68 = arith.addf %64, %67 : vector<8x1xf32>
    %69 = math.rsqrt %68 : vector<8x1xf32>
    %70 = vector.broadcast %69 : vector<8x1xf32> to vector<8x128xf32>
    %71 = arith.mulf %66, %70 : vector<8x128xf32>
    %72 = vector.broadcast %47 : vector<1x128xf32> to vector<8x128xf32>
    %73 = arith.mulf %71, %72 : vector<8x128xf32>
    %74 = vector.broadcast %48 : vector<1x128xf32> to vector<8x128xf32>
    %75 = arith.addf %73, %74 : vector<8x128xf32>
    %76 = arith.negf %75 : vector<8x128xf32>
    %77 = math.exp %76 : vector<8x128xf32>
    %cst_32 = arith.constant 1.000000e+00 : f32
    %78 = vector.broadcast %cst_32 : f32 to vector<8x128xf32>
    %79 = arith.addf %78, %77 : vector<8x128xf32>
    %80 = arith.divf %78, %79 : vector<8x128xf32>
    %81 = arith.mulf %75, %80 : vector<8x128xf32>
    %82 = arith.truncf %81 : vector<8x128xf32> to vector<8x128xbf16>
    %c0_33 = arith.constant 0 : index
    %c0_34 = arith.constant 0 : index
    %83 = vector.load %arg10[%c0_33, %c0_34] : memref<128x128xbf16, #tpu.memory_space<vmem>>, vector<128x128xbf16>
    %cst_35 = arith.constant dense<0.000000e+00> : vector<8x128xf32>
    %84 = tpu.matmul %82, %83, %cst_35 {dimension_numbers = #tpu.dot_dimension_numbers<[1], [0], [0], [1], [0, 0, 1, 1], [], []>} : vector<8x128xbf16>, vector<128x128xbf16>, vector<8x128xf32> -> vector<8x128xf32>
    %c0_36 = arith.constant 0 : index
    %c0_37 = arith.constant 0 : index
    %85 = vector.load %arg11[%c0_36, %c0_37] : memref<1x128xf32, #tpu.memory_space<vmem>>, vector<1x128xf32>
    %86 = vector.broadcast %85 : vector<1x128xf32> to vector<8x128xf32>
    %87 = arith.addf %84, %86 : vector<8x128xf32>
    %c0_38 = arith.constant 0 : index
    %c0_39 = arith.constant 0 : index
    %88 = vector.load %arg12[%c0_38, %c0_39] : memref<8x128xf32, #tpu.memory_space<vmem>>, vector<8x128xf32>
    tpu.vector_store %arg12[%c0_38, %c0_39], %87 {strides = array<i32>} : memref<8x128xf32, #tpu.memory_space<vmem>>, vector<8x128xf32>,
    return
  }
  func.func @transform_0(%arg0: i32) -> (i32, i32) {
    %c0_i32 = arith.constant 0 : i32
    %c0_i32_0 = arith.constant 0 : i32
    return %arg0, %c0_i32 : i32, i32
  }
  func.func @transform_1(%arg0: i32) -> (i32, i32) {
    %c0_i32 = arith.constant 0 : i32
    %c0_i32_0 = arith.constant 0 : i32
    %c0_i32_1 = arith.constant 0 : i32
    return %c0_i32, %c0_i32_0 : i32, i32
  }
  func.func @transform_2(%arg0: i32) -> (i32, i32) {
    %c0_i32 = arith.constant 0 : i32
    %c0_i32_0 = arith.constant 0 : i32
    %c0_i32_1 = arith.constant 0 : i32
    return %c0_i32, %c0_i32_0 : i32, i32
  }
  func.func @transform_3(%arg0: i32) -> (i32, i32) {
    %c0_i32 = arith.constant 0 : i32
    %c0_i32_0 = arith.constant 0 : i32
    %c0_i32_1 = arith.constant 0 : i32
    return %c0_i32, %c0_i32_0 : i32, i32
  }
  func.func @transform_4(%arg0: i32) -> (i32, i32) {
    %c0_i32 = arith.constant 0 : i32
    %c0_i32_0 = arith.constant 0 : i32
    %c0_i32_1 = arith.constant 0 : i32
    return %c0_i32, %c0_i32_0 : i32, i32
  }
  func.func @transform_5(%arg0: i32) -> (i32, i32) {
    %c0_i32 = arith.constant 0 : i32
    %c0_i32_0 = arith.constant 0 : i32
    %c0_i32_1 = arith.constant 0 : i32
    return %c0_i32, %c0_i32_0 : i32, i32
  }
  func.func @transform_6(%arg0: i32) -> (i32, i32) {
    %c0_i32 = arith.constant 0 : i32
    %c0_i32_0 = arith.constant 0 : i32
    %c0_i32_1 = arith.constant 0 : i32
    return %c0_i32, %c0_i32_0 : i32, i32
  }
  func.func @transform_7(%arg0: i32) -> (i32, i32) {
    %c0_i32 = arith.constant 0 : i32
    %c0_i32_0 = arith.constant 0 : i32
    %c0_i32_1 = arith.constant 0 : i32
    return %c0_i32, %c0_i32_0 : i32, i32
  }
  func.func @transform_8(%arg0: i32) -> (i32, i32) {
    %c0_i32 = arith.constant 0 : i32
    %c0_i32_0 = arith.constant 0 : i32
    %c0_i32_1 = arith.constant 0 : i32
    return %c0_i32, %c0_i32_0 : i32, i32
  }
  func.func @transform_9(%arg0: i32) -> (i32, i32) {
    %c0_i32 = arith.constant 0 : i32
    %c0_i32_0 = arith.constant 0 : i32
    %c0_i32_1 = arith.constant 0 : i32
    return %c0_i32, %c0_i32_0 : i32, i32
  }
  func.func @transform_10(%arg0: i32) -> (i32, i32) {
    %c0_i32 = arith.constant 0 : i32
    %c0_i32_0 = arith.constant 0 : i32
    %c0_i32_1 = arith.constant 0 : i32
    return %c0_i32, %c0_i32_0 : i32, i32
  }
  func.func @transform_11(%arg0: i32) -> (i32, i32) {
    %c0_i32 = arith.constant 0 : i32
    %c0_i32_0 = arith.constant 0 : i32
    return %arg0, %c0_i32 : i32, i32
  }
}

</mosaic_0001>

<bundles_post_ra>
// kernel: tpu_custom_call.1
= control target key start
LH: loop header
LB: loop body
LE: loop exit
PB: predicated region body
PF: predicated region fallthrough
CT: control target
= control target key end

     0   :  { %16 = vsyncpa [#allocation3], 0  ;;  %s939_s0 = inlined_call_operand.hbm [shape: bf16[8,128], index: 0, kind: input, shape index: {}]   ;;  %s940_s1 = inlined_call_operand.hbm [shape: bf16[128,128], index: 1, kind: input, shape index: {}]   ;;  %s941_s2 = inlined_call_operand.vmem [shape: f32[1,128], index: 2, kind: input, shape index: {}]   ;;  %s942_s3 = inlined_call_operand.vmem [shape: f32[1,128], index: 3, kind: input, shape index: {}]   ;;  %s943_s4 = inlined_call_operand.vmem [shape: f32[1,128], index: 4, kind: input, shape index: {}]   ;;  %s944_s5 = inlined_call_operand.hbm [shape: bf16[128,128], index: 5, kind: input, shape index: {}]   ;;  %s945_s6 = inlined_call_operand.vmem [shape: f32[1,128], index: 6, kind: input, shape index: {}]   ;;  %s946_s7 = inlined_call_operand.vmem [shape: f32[1,128], index: 7, kind: input, shape index: {}]   ;;  %s947_s8 = inlined_call_operand.vmem [shape: f32[1,128], index: 8, kind: input, shape index: {}]   ;;  %s948_s9 = inlined_call_operand.hbm [shape: bf16[128,128], index: 9, kind: input, shape index: {}]   ;;  %s949_s10 = inlined_call_operand.vmem [shape: f32[1,128], index: 10, kind: input, shape index: {}]   ;;  %s950_s11 = inlined_call_operand.hbm [shape: f32[8,128], index: 11, kind: output, shape index: {}]  }
   0x1   :  { %17 = vsyncpa [#allocation6], 0 }
   0x2   :  { %18 = vsyncpa [#allocation9], 0 }
   0x3   :  { %19 = vsyncpa [#allocation4], 0  ;;  %s793_s17 = smov [#allocation5]  }
   0x4   :  { %s35_s18 = sshll.u32 %s793_s17, 4  ;;  %s36_s18 = int_to_ptr.vmem [resolvable:$true] %s35_s18 }
   0x5   :  { %s693_s19 = scalar_lea.vmem %s36_s18, 1024  ;;  %p698_p1 = scmp.lt.s32.totalorder %s36_s18, %s36_s18 }
   0x6   :  { %p694_p0 = scmp.ne.s32.totalorder %s36_s18, %s693_s19  ;;  %p699_p2 = scmp.lt.s32.totalorder %s693_s19, %s693_s19 }
   0x8   :  { %p700_p3 = por %p699_p2, %p698_p1 }
   0xa   :  { %p701_p4 = pnand %p700_p3, %p694_p0 }
   0xc   :  { %704 = shalt.err (!%p701_p4)
}
   0xd   :  { %s794_s20 = smov 64   ;;  %s795_s21 = smov 4  }
   0xe   :  { %41 = dma.hbm_to_vmem [thread:$0]  %s940_s1, 1024, %s36_s18, [#allocation6], %s794_s20, %s794_s20, %s795_s21  }
   0xf   :  { %s796_s24 = smov [#allocation2]   ;;  %s797_s26 = smov [#allocation7]  }
  0x10   :  { %s26_s25 = sshll.u32 %s796_s24, 4  ;;  %s53_s27 = sshll.u32 %s797_s26, 4  ;;  %s27_s25 = int_to_ptr.vmem [resolvable:$true] %s26_s25  ;;  %s54_s27 = int_to_ptr.vmem [resolvable:$true] %s53_s27 }
  0x11   :  { %s713_s28 = scalar_lea.vmem %s27_s25, 64  ;;  %p718_p6 = scmp.lt.s32.totalorder %s27_s25, %s27_s25 }
  0x12   :  { %p714_p5 = scmp.ne.s32.totalorder %s27_s25, %s713_s28  ;;  %p719_p7 = scmp.lt.s32.totalorder %s713_s28, %s713_s28 }
  0x14   :  { %p720_p8 = por %p719_p7, %p718_p6 }
  0x16   :  { %p721_p9 = pnand %p720_p8, %p714_p5 }
  0x18   :  { %724 = shalt.err (!%p721_p9)
}
  0x19   :  { %29 = dma.hbm_to_vmem [thread:$0]  %s939_s0, 64, %s27_s25, [#allocation3]  }
  0x1a   :  { %s733_s12 = scalar_lea.vmem %s54_s27, 1024  ;;  %p738_p11 = scmp.lt.s32.totalorder %s54_s27, %s54_s27 }
  0x1b   :  { %p734_p10 = scmp.ne.s32.totalorder %s54_s27, %s733_s12  ;;  %p739_p12 = scmp.lt.s32.totalorder %s733_s12, %s733_s12 }
  0x1d   :  { %p740_p13 = por %p739_p12, %p738_p11 }
  0x1f   :  { %p741_p0 = pnand %p740_p13, %p734_p10 }
  0x21   :  { %744 = shalt.err (!%p741_p0)
}
  0x22   :  { %59 = dma.hbm_to_vmem [thread:$0]  %s944_s5, 1024, %s54_s27, [#allocation6], %s794_s20, %s794_s20, %s795_s21  }
  0x23   :  { %s798_s14 = smov [#allocation8]  }
  0x24   :  { %s71_s15 = sshll.u32 %s798_s14, 4  ;;  %s72_s15 = int_to_ptr.vmem [resolvable:$true] %s71_s15 }
  0x25   :  { %s753_s16 = scalar_lea.vmem %s72_s15, 1024  ;;  %p758_p2 = scmp.lt.s32.totalorder %s72_s15, %s72_s15 }
  0x26   :  { %p754_p1 = scmp.ne.s32.totalorder %s72_s15, %s753_s16  ;;  %p759_p3 = scmp.lt.s32.totalorder %s753_s16, %s753_s16 }
  0x28   :  { %p760_p4 = por %p759_p3, %p758_p2 }
  0x2a   :  { %p761_p5 = pnand %p760_p4, %p754_p1 }
  0x2c   :  { %764 = shalt.err (!%p761_p5)
}
  0x2d   :  { %77 = dma.hbm_to_vmem [thread:$0]  %s948_s9, 1024, %s72_s15, [#allocation9], %s794_s20, %s794_s20, %s795_s21  }
  0x2e   :  { %785 = dma.done.wait [#allocation3], 64  }
  0x2f   :  { %786 = vsyncadd [#allocation3], 4294967232 }
  0x30   :  { %787 = dma.done.wait [#allocation6], 2048  }
  0x31   :  { %788 = vsyncadd [#allocation6], 4294965248 }
  0x32   :  { %789 = dma.done.wait [#allocation9], 1024  }
  0x33   :  { %790 = vsyncadd [#allocation9], 4294966272  ;;  %v799_v0 = vmov 0.0   ;;  %vm800_vm0 = vmmov 0   ;;  %v649_v1 = vld [vmem:[#allocation5 + $0x38] sm:$0xff]   ;;  %v650_v2 = vld [vmem:[#allocation5 + $0x30] sm:$0xff]   ;;  %v207_v16 = vlaneseq }
  0x34   :  { %580 = vmatprep.subr.bf16.mxu0 %v799_v0  ;;  %596 = vmatprep.mubr.msk.bf16.mxu0 %vm800_vm0, %v799_v0  ;;  %v651_v3 = vld [vmem:[#allocation5 + $0x28] sm:$0xff]   ;;  %v652_v4 = vld [vmem:[#allocation5 + $0x20] sm:$0xff]   ;;  %v653_v5 = vld [vmem:[#allocation5 + $0x18] sm:$0xff]  }
  0x35   :  { %600 = vmatprep.subr.bf16.mxu1 %v799_v0  ;;  %616 = vmatprep.mubr.msk.bf16.mxu1 %vm800_vm0, %v799_v0  ;;  %v654_v6 = vld [vmem:[#allocation5 + $0x10] sm:$0xff]   ;;  %v655_v7 = vld [vmem:[#allocation5 + $0x8] sm:$0xff]   ;;  %v656_v8 = vld [vmem:[#allocation5] sm:$0xff]   ;;  %v208_v17 = vand.u32 127, %v207_v16 }
  0x36   :  { %581 = vmatpush3.bf16.msra.mxu0 %v649_v1  ;;  %v93_v9 = vld [vmem:[#allocation2] sm:$0xf]  ;;  %v658_v24 = vld [vmem:[#allocation7 + $0x30] sm:$0xff]   ;;  %v659_v25 = vld [vmem:[#allocation7 + $0x28] sm:$0xff]  }
  0x37   :  { %582 = vmatprep.subr.bf16.mxu0 %v799_v0  ;;  %v520_v10 = vld [vmem:[%s941_s2] ss:$0 sm:$0xff]  ;;  %vm209_vm1 = vcmp.lt.s32.totalorder %v208_v17, 32  ;;  %v660_v26 = vld [vmem:[#allocation7 + $0x20] sm:$0xff]   ;;  %v662_v28 = vld [vmem:[#allocation7 + $0x10] sm:$0xff]  }
  0x38   :  { %v657_v23 = vld [vmem:[#allocation7 + $0x38] sm:$0xff]   ;;  %v663_v29 = vld [vmem:[#allocation7 + $0x8] sm:$0xff]   ;;  %v664_v30 = vld [vmem:[#allocation7] sm:$0xff]  }
  0x39   :  { %601 = vmatpush3.bf16.msra.mxu1 %v657_v23  ;;  %v661_v27 = vld [vmem:[#allocation7 + $0x18] sm:$0xff]   ;;  %v666_v58 = vld [vmem:[#allocation8 + $0x30] sm:$0xff]   ;;  %v667_v59 = vld [vmem:[#allocation8 + $0x28] sm:$0xff]  }
  0x3a   :  { %583 = vmatpush3.bf16.msra.mxu0 %v650_v2  ;;  %602 = vmatprep.subr.bf16.mxu1 %v799_v0  ;;  %v529_v35 = vld [vmem:[%s942_s3] ss:$0 sm:$0xff]  ;;  %v668_v60 = vld [vmem:[#allocation8 + $0x20] sm:$0xff]   ;;  %v670_v62 = vld [vmem:[#allocation8 + $0x10] sm:$0xff]  }
  0x3b   :  { %584 = vmatprep.subr.bf16.mxu0 %v799_v0  ;;  %v530_v37 = vld [vmem:[%s943_s4] ss:$0 sm:$0xff]  ;;  %v671_v63 = vld [vmem:[#allocation8 + $0x8] sm:$0xff]   ;;  %v672_v1 = vld [vmem:[#allocation8] sm:$0xff]  }
  0x3c   :  { %v532_v46 = vld [vmem:[%s945_s6] ss:$0 sm:$0xff] }
  0x3d   :  { %603 = vmatpush3.bf16.msra.mxu1 %v658_v24  ;;  %v665_v57 = vld [vmem:[#allocation8 + $0x38] sm:$0xff]  }
  0x3e   :  { %585 = vmatpush3.bf16.msra.mxu0 %v651_v3  ;;  %604 = vmatprep.subr.bf16.mxu1 %v799_v0  ;;  %v669_v61 = vld [vmem:[#allocation8 + $0x18] sm:$0xff]  }
  0x3f   :  { %586 = vmatprep.subr.bf16.mxu0 %v799_v0  ;;  %v544_v16 = vld [vmem:[%s949_s10] ss:$0 sm:$0xff] }
  0x41   :  { %605 = vmatpush3.bf16.msra.mxu1 %v659_v25 }
  0x42   :  { %587 = vmatpush3.bf16.msra.mxu0 %v652_v4  ;;  %606 = vmatprep.subr.bf16.mxu1 %v799_v0 }
  0x43   :  { %588 = vmatprep.subr.bf16.mxu0 %v799_v0 }
  0x45   :  { %607 = vmatpush3.bf16.msra.mxu1 %v660_v26 }
  0x46   :  { %589 = vmatpush3.bf16.msra.mxu0 %v653_v5  ;;  %608 = vmatprep.subr.bf16.mxu1 %v799_v0 }
  0x47   :  { %590 = vmatprep.subr.bf16.mxu0 %v799_v0 }
  0x49   :  { %609 = vmatpush3.bf16.msra.mxu1 %v661_v27 }
  0x4a   :  { %591 = vmatpush3.bf16.msra.mxu0 %v654_v6  ;;  %610 = vmatprep.subr.bf16.mxu1 %v799_v0  ;;  %v541_v6 = vld [vmem:[%s946_s7] ss:$0 sm:$0xff]  ;;  %s801_s7 = smov [#allocation10]  }
  0x4b   :  { %592 = vmatprep.subr.bf16.mxu0 %v799_v0  ;;  %s509_s26 = sshll.u32 %s801_s7, 4  ;;  %s510_s26 = int_to_ptr.vmem [resolvable:$true] %s509_s26 }
  0x4c   :  { %p770_p7 = scmp.lt.s32.totalorder %s510_s26, %s510_s26 }
  0x4d   :  { %611 = vmatpush3.bf16.msra.mxu1 %v662_v28 }
  0x4e   :  { %593 = vmatpush3.bf16.msra.mxu0 %v655_v7  ;;  %612 = vmatprep.subr.bf16.mxu1 %v799_v0 }
  0x4f   :  { %594 = vmatprep.subr.bf16.mxu0 %v799_v0 }
  0x51   :  { %613 = vmatpush3.bf16.msra.mxu1 %v663_v29 }
  0x52   :  { %595 = vmatpush3.bf16.msra.mxu0 %v656_v8  ;;  %614 = vmatprep.subr.bf16.mxu1 %v799_v0  ;;  %v542_v8 = vld [vmem:[%s947_s8] ss:$0 sm:$0xff]  ;;  %s765_s8 = scalar_lea.vmem %s510_s26, 128 }
  0x53   :  { %620 = vmatprep.subr.bf16.mxu0 %v799_v0  ;;  %p766_p6 = scmp.ne.s32.totalorder %s510_s26, %s765_s8  ;;  %p771_p8 = scmp.lt.s32.totalorder %s765_s8, %s765_s8 }
  0x55   :  { %597 = vmatmul.mubr.bf16.vlgmr.msra.gmra.mxu0 %v93_v9  ;;  %615 = vmatpush3.bf16.msra.mxu1 %v664_v30  ;;  %p772_p9 = por %p771_p8, %p770_p7 }
  0x56   :  { %636 = vmatprep.mubr.msk.bf16.mxu0 %vm800_vm0, %v799_v0  ;;  %621 = vmatpush3.bf16.msra.mxu0 %v665_v57 }
  0x57   :  { %622 = vmatprep.subr.bf16.mxu0 %v799_v0  ;;  %p773_p10 = pnand %p772_p9, %p766_p6 }
  0x5a   :  { %623 = vmatpush3.bf16.msra.mxu0 %v666_v58 }
  0x5b   :  { %624 = vmatprep.subr.bf16.mxu0 %v799_v0 }
  0x5e   :  { %625 = vmatpush3.bf16.msra.mxu0 %v667_v59 }
  0x5f   :  { %626 = vmatprep.subr.bf16.mxu0 %v799_v0 }
  0x62   :  { %627 = vmatpush3.bf16.msra.mxu0 %v668_v60 }
  0x63   :  { %628 = vmatprep.subr.bf16.mxu0 %v799_v0 }
  0x66   :  { %629 = vmatpush3.bf16.msra.mxu0 %v669_v61 }
  0x67   :  { %630 = vmatprep.subr.bf16.mxu0 %v799_v0 }
  0x6a   :  { %631 = vmatpush3.bf16.msra.mxu0 %v670_v62 }
  0x6b   :  { %632 = vmatprep.subr.bf16.mxu0 %v799_v0 }
  0x6e   :  { %633 = vmatpush3.bf16.msra.mxu0 %v671_v63 }
  0x6f   :  { %634 = vmatprep.subr.bf16.mxu0 %v799_v0 }
  0x72   :  { %635 = vmatpush3.bf16.msra.mxu0 %v672_v1 }
 0x115   :  { %v199_v11 = vpop.f32.mrf.mxu0 }
 0x116   :  { %v200_v12 = vadd.f32 %v520_v10, %v199_v11 }
 0x117   :  { %v598_v13 = vpop.f32.mrf.mxu0 }
 0x118   :  { %210 = vadd.xlane.f32.xlu0 %v200_v12 }
 0x119   :  { %v202_v14 = vpop.f32.mrf.mxu0 }
 0x11b   :  { %v599_v15 = vpop.f32.mrf.mxu0 }
 0x1a1   :  { %v211_v18 = vpop.xlane.xlu0 %210 }
 0x1a2   :  { %v212_v19 = vmul.f32 0.03125, %v211_v18 }
 0x1a4   :  { %v213_v20 = vsub.f32 %v200_v12, %v212_v19 }
 0x1a6   :  { %v214_v21 = vsel %vm209_vm1, %v213_v20, 0.0 }
 0x1a7   :  { %v215_v22 = vmul.f32 %v214_v21, %v214_v21 }
 0x1a9   :  { %216 = vadd.xlane.f32.xlu0 %v215_v22 }
 0x232   :  { %v217_v31 = vpop.xlane.xlu0 %216 }
 0x233   :  { %v218_v32 = vmul.f32 0.03125, %v217_v31 }
 0x235   :  { %v219_v33 = vadd.f32 1e-05, %v218_v32 }
 0x237   :  { %673 = vrsqrt.f32 %v219_v33 }
 0x244   :  { %v674_v34 = vpop.eup %673 }
 0x245   :  { %v221_v36 = vmul.f32 %v674_v34, %v213_v20 }
 0x247   :  { %v228_v38 = vmul.f32 %v529_v35, %v221_v36 }
 0x249   :  { %v235_v39 = vadd.f32 %v530_v37, %v228_v38 }
 0x24b   :  { %v531_v40 = vmul.f32 -1.442695, %v235_v39 }
 0x24d   :  { %675 = vpow2.f32 %v531_v40 }
 0x25a   :  { %v676_v41 = vpop.eup %675 }
 0x25b   :  { %v239_v42 = vadd.f32 1.0, %v676_v41 }
 0x25d   :  { %677 = vrcp.f32 %v239_v42 }
 0x26a   :  { %v678_v43 = vpop.eup %677 }
 0x26b   :  { %v242_v44 = vmul.f32 %v678_v43, %v235_v39 }
 0x26d   :  { %v243_v45 = vpack.c.bf16 %v242_v44, %v242_v44 }
 0x26f   :  { %617 = vmatmul.mubr.bf16.vlgmr.msra.gmra.mxu1 %v243_v45 }
 0x32f   :  { %v349_v47 = vpop.f32.mrf.mxu1 }
 0x330   :  { %v350_v48 = vadd.f32 %v532_v46, %v349_v47 }
 0x331   :  { %v618_v49 = vpop.f32.mrf.mxu1 }
 0x332   :  { %357 = vadd.xlane.f32.xlu1 %v350_v48 }
 0x333   :  { %v352_v50 = vpop.f32.mrf.mxu1 }
 0x335   :  { %v619_v51 = vpop.f32.mrf.mxu1 }
 0x3bb   :  { %v358_v52 = vpop.xlane.xlu1 %357 }
 0x3bc   :  { %v359_v53 = vmul.f32 0.03125, %v358_v52 }
 0x3be   :  { %v360_v54 = vsub.f32 %v350_v48, %v359_v53 }
 0x3c0   :  { %v361_v55 = vsel %vm209_vm1, %v360_v54, 0.0 }
 0x3c1   :  { %v362_v56 = vmul.f32 %v361_v55, %v361_v55 }
 0x3c3   :  { %363 = vadd.xlane.f32.xlu1 %v362_v56 }
 0x44c   :  { %v364_v2 = vpop.xlane.xlu1 %363 }
 0x44d   :  { %v365_v3 = vmul.f32 0.03125, %v364_v2 }
 0x44f   :  { %v366_v4 = vadd.f32 1e-05, %v365_v3 }
 0x451   :  { %679 = vrsqrt.f32 %v366_v4 }
 0x45e   :  { %v680_v5 = vpop.eup %679 }
 0x45f   :  { %v368_v7 = vmul.f32 %v680_v5, %v360_v54 }
 0x461   :  { %v375_v9 = vmul.f32 %v541_v6, %v368_v7 }
 0x463   :  { %v382_v10 = vadd.f32 %v542_v8, %v375_v9 }
 0x465   :  { %v543_v11 = vmul.f32 -1.442695, %v382_v10 }
 0x467   :  { %681 = vpow2.f32 %v543_v11 }
 0x474   :  { %v682_v0 = vpop.eup %681 }
 0x475   :  { %v386_v12 = vadd.f32 1.0, %v682_v0 }
 0x477   :  { %683 = vrcp.f32 %v386_v12 }
 0x484   :  { %v684_v13 = vpop.eup %683 }
 0x485   :  { %v389_v14 = vmul.f32 %v684_v13, %v382_v10 }
 0x487   :  { %v390_v15 = vpack.c.bf16 %v389_v14, %v389_v14 }
 0x489   :  { %637 = vmatmul.mubr.bf16.vlgmr.msra.gmra.mxu0 %v390_v15 }
 0x549   :  { %v496_v17 = vpop.f32.mrf.mxu0 }
 0x54a   :  { %v497_v18 = vadd.f32 %v544_v16, %v496_v17 }
 0x54b   :  { %v638_v19 = vpop.f32.mrf.mxu0 }
 0x54c   :  { %502 = vst [vmem:[#allocation10] sm:$0xff] %v497_v18 }
 0x54d   :  { %v499_v20 = vpop.f32.mrf.mxu0 }
 0x54e   :  { %776 = shalt.err (!%p773_p10)
}
 0x54f   :  { %512 = dma.vmem_to_hbm [thread:$0]  %s510_s26, 128, %s950_s11, [#allocation4]   ;;  %v639_v21 = vpop.f32.mrf.mxu0 }
 0x550   :  { %791 = dma.done.wait [#allocation4], 128  }
 0x551   :  { %792 = vsyncadd [#allocation4], 4294967168 }
 0x552   :  { %516 = vsyncpa [#allocation3], 1 }
 0x553   :  { %517 = vsyncpa [#allocation6], 1 }
 0x554   :  { %518 = vsyncpa [#allocation9], 1 }
 0x555   :  { %519 = vsyncpa [#allocation4], 1 }

// kernel: tpu_custom_call.1
= control target key start
LH: loop header
LB: loop body
LE: loop exit
PB: predicated region body
PF: predicated region fallthrough
CT: control target
= control target key end

     0   :  { %16 = vsyncpa [#allocation3], 0  ;;  %s939_s0 = inlined_call_operand.hbm [shape: bf16[8,128], index: 0, kind: input, shape index: {}]   ;;  %s940_s1 = inlined_call_operand.hbm [shape: bf16[128,128], index: 1, kind: input, shape index: {}]   ;;  %s941_s2 = inlined_call_operand.vmem [shape: f32[1,128], index: 2, kind: input, shape index: {}]   ;;  %s942_s3 = inlined_call_operand.vmem [shape: f32[1,128], index: 3, kind: input, shape index: {}]   ;;  %s943_s4 = inlined_call_operand.vmem [shape: f32[1,128], index: 4, kind: input, shape index: {}]   ;;  %s944_s5 = inlined_call_operand.hbm [shape: bf16[128,128], index: 5, kind: input, shape index: {}]   ;;  %s945_s6 = inlined_call_operand.vmem [shape: f32[1,128], index: 6, kind: input, shape index: {}]   ;;  %s946_s7 = inlined_call_operand.vmem [shape: f32[1,128], index: 7, kind: input, shape index: {}]   ;;  %s947_s8 = inlined_call_operand.vmem [shape: f32[1,128], index: 8, kind: input, shape index: {}]   ;;  %s948_s9 = inlined_call_operand.hbm [shape: bf16[128,128], index: 9, kind: input, shape index: {}]   ;;  %s949_s10 = inlined_call_operand.vmem [shape: f32[1,128], index: 10, kind: input, shape index: {}]   ;;  %s950_s11 = inlined_call_operand.hbm [shape: f32[8,128], index: 11, kind: output, shape index: {}]  }
   0x1   :  { %17 = vsyncpa [#allocation6], 0 }
   0x2   :  { %18 = vsyncpa [#allocation9], 0 }
   0x3   :  { %19 = vsyncpa [#allocation4], 0  ;;  %s793_s17 = smov [#allocation5]  }
   0x4   :  { %s35_s18 = sshll.u32 %s793_s17, 4  ;;  %s36_s18 = int_to_ptr.vmem [resolvable:$true] %s35_s18 }
   0x5   :  { %s693_s19 = scalar_lea.vmem %s36_s18, 1024  ;;  %p698_p1 = scmp.lt.s32.totalorder %s36_s18, %s36_s18 }
   0x6   :  { %p694_p0 = scmp.ne.s32.totalorder %s36_s18, %s693_s19  ;;  %p699_p2 = scmp.lt.s32.totalorder %s693_s19, %s693_s19 }
   0x8   :  { %p700_p3 = por %p699_p2, %p698_p1 }
   0xa   :  { %p701_p4 = pnand %p700_p3, %p694_p0 }
   0xc   :  { %704 = shalt.err (!%p701_p4)
}
   0xd   :  { %s794_s20 = smov 64   ;;  %s795_s21 = smov 4  }
   0xe   :  { %41 = dma.hbm_to_vmem [thread:$0]  %s940_s1, 1024, %s36_s18, [#allocation6], %s794_s20, %s794_s20, %s795_s21  }
   0xf   :  { %s796_s24 = smov [#allocation2]   ;;  %s797_s26 = smov [#allocation7]  }
  0x10   :  { %s26_s25 = sshll.u32 %s796_s24, 4  ;;  %s53_s27 = sshll.u32 %s797_s26, 4  ;;  %s27_s25 = int_to_ptr.vmem [resolvable:$true] %s26_s25  ;;  %s54_s27 = int_to_ptr.vmem [resolvable:$true] %s53_s27 }
  0x11   :  { %s713_s28 = scalar_lea.vmem %s27_s25, 64  ;;  %p718_p6 = scmp.lt.s32.totalorder %s27_s25, %s27_s25 }
  0x12   :  { %p714_p5 = scmp.ne.s32.totalorder %s27_s25, %s713_s28  ;;  %p719_p7 = scmp.lt.s32.totalorder %s713_s28, %s713_s28 }
  0x14   :  { %p720_p8 = por %p719_p7, %p718_p6 }
  0x16   :  { %p721_p9 = pnand %p720_p8, %p714_p5 }
  0x18   :  { %724 = shalt.err (!%p721_p9)
}
  0x19   :  { %29 = dma.hbm_to_vmem [thread:$0]  %s939_s0, 64, %s27_s25, [#allocation3]  }
  0x1a   :  { %s733_s12 = scalar_lea.vmem %s54_s27, 1024  ;;  %p738_p11 = scmp.lt.s32.totalorder %s54_s27, %s54_s27 }
  0x1b   :  { %p734_p10 = scmp.ne.s32.totalorder %s54_s27, %s733_s12  ;;  %p739_p12 = scmp.lt.s32.totalorder %s733_s12, %s733_s12 }
  0x1d   :  { %p740_p13 = por %p739_p12, %p738_p11 }
  0x1f   :  { %p741_p0 = pnand %p740_p13, %p734_p10 }
  0x21   :  { %744 = shalt.err (!%p741_p0)
}
  0x22   :  { %59 = dma.hbm_to_vmem [thread:$0]  %s944_s5, 1024, %s54_s27, [#allocation6], %s794_s20, %s794_s20, %s795_s21  }
  0x23   :  { %s798_s14 = smov [#allocation8]  }
  0x24   :  { %s71_s15 = sshll.u32 %s798_s14, 4  ;;  %s72_s15 = int_to_ptr.vmem [resolvable:$true] %s71_s15 }
  0x25   :  { %s753_s16 = scalar_lea.vmem %s72_s15, 1024  ;;  %p758_p2 = scmp.lt.s32.totalorder %s72_s15, %s72_s15 }
  0x26   :  { %p754_p1 = scmp.ne.s32.totalorder %s72_s15, %s753_s16  ;;  %p759_p3 = scmp.lt.s32.totalorder %s753_s16, %s753_s16 }
  0x28   :  { %p760_p4 = por %p759_p3, %p758_p2 }
  0x2a   :  { %p761_p5 = pnand %p760_p4, %p754_p1 }
  0x2c   :  { %764 = shalt.err (!%p761_p5)
}
  0x2d   :  { %77 = dma.hbm_to_vmem [thread:$0]  %s948_s9, 1024, %s72_s15, [#allocation9], %s794_s20, %s794_s20, %s795_s21  }
  0x2e   :  { %785 = dma.done.wait [#allocation3], 64  }
  0x2f   :  { %786 = vsyncadd [#allocation3], 4294967232 }
  0x30   :  { %787 = dma.done.wait [#allocation6], 2048  }
  0x31   :  { %788 = vsyncadd [#allocation6], 4294965248 }
  0x32   :  { %789 = dma.done.wait [#allocation9], 1024  }
  0x33   :  { %790 = vsyncadd [#allocation9], 4294966272  ;;  %v799_v0 = vmov 0.0   ;;  %vm800_vm0 = vmmov 0   ;;  %v649_v1 = vld [vmem:[#allocation5 + $0x38] sm:$0xff]   ;;  %v650_v2 = vld [vmem:[#allocation5 + $0x30] sm:$0xff]   ;;  %v207_v16 = vlaneseq }
  0x34   :  { %580 = vmatprep.subr.bf16.mxu0 %v799_v0  ;;  %596 = vmatprep.mubr.msk.bf16.mxu0 %vm800_vm0, %v799_v0  ;;  %v651_v3 = vld [vmem:[#allocation5 + $0x28] sm:$0xff]   ;;  %v652_v4 = vld [vmem:[#allocation5 + $0x20] sm:$0xff]   ;;  %v653_v5 = vld [vmem:[#allocation5 + $0x18] sm:$0xff]  }
  0x35   :  { %600 = vmatprep.subr.bf16.mxu1 %v799_v0  ;;  %616 = vmatprep.mubr.msk.bf16.mxu1 %vm800_vm0, %v799_v0  ;;  %v654_v6 = vld [vmem:[#allocation5 + $0x10] sm:$0xff]   ;;  %v655_v7 = vld [vmem:[#allocation5 + $0x8] sm:$0xff]   ;;  %v656_v8 = vld [vmem:[#allocation5] sm:$0xff]   ;;  %v208_v17 = vand.u32 127, %v207_v16 }
  0x36   :  { %581 = vmatpush3.bf16.msra.mxu0 %v649_v1  ;;  %v93_v9 = vld [vmem:[#allocation2] sm:$0xf]  ;;  %v658_v24 = vld [vmem:[#allocation7 + $0x30] sm:$0xff]   ;;  %v659_v25 = vld [vmem:[#allocation7 + $0x28] sm:$0xff]  }
  0x37   :  { %582 = vmatprep.subr.bf16.mxu0 %v799_v0  ;;  %v520_v10 = vld [vmem:[%s941_s2] ss:$0 sm:$0xff]  ;;  %vm209_vm1 = vcmp.lt.s32.totalorder %v208_v17, 32  ;;  %v660_v26 = vld [vmem:[#allocation7 + $0x20] sm:$0xff]   ;;  %v662_v28 = vld [vmem:[#allocation7 + $0x10] sm:$0xff]  }
  0x38   :  { %v657_v23 = vld [vmem:[#allocation7 + $0x38] sm:$0xff]   ;;  %v663_v29 = vld [vmem:[#allocation7 + $0x8] sm:$0xff]   ;;  %v664_v30 = vld [vmem:[#allocation7] sm:$0xff]  }
  0x39   :  { %601 = vmatpush3.bf16.msra.mxu1 %v657_v23  ;;  %v661_v27 = vld [vmem:[#allocation7 + $0x18] sm:$0xff]   ;;  %v666_v58 = vld [vmem:[#allocation8 + $0x30] sm:$0xff]   ;;  %v667_v59 = vld [vmem:[#allocation8 + $0x28] sm:$0xff]  }
  0x3a   :  { %583 = vmatpush3.bf16.msra.mxu0 %v650_v2  ;;  %602 = vmatprep.subr.bf16.mxu1 %v799_v0  ;;  %v529_v35 = vld [vmem:[%s942_s3] ss:$0 sm:$0xff]  ;;  %v668_v60 = vld [vmem:[#allocation8 + $0x20] sm:$0xff]   ;;  %v670_v62 = vld [vmem:[#allocation8 + $0x10] sm:$0xff]  }
  0x3b   :  { %584 = vmatprep.subr.bf16.mxu0 %v799_v0  ;;  %v530_v37 = vld [vmem:[%s943_s4] ss:$0 sm:$0xff]  ;;  %v671_v63 = vld [vmem:[#allocation8 + $0x8] sm:$0xff]   ;;  %v672_v1 = vld [vmem:[#allocation8] sm:$0xff]  }
  0x3c   :  { %v532_v46 = vld [vmem:[%s945_s6] ss:$0 sm:$0xff] }
  0x3d   :  { %603 = vmatpush3.bf16.msra.mxu1 %v658_v24  ;;  %v665_v57 = vld [vmem:[#allocation8 + $0x38] sm:$0xff]  }
  0x3e   :  { %585 = vmatpush3.bf16.msra.mxu0 %v651_v3  ;;  %604 = vmatprep.subr.bf16.mxu1 %v799_v0  ;;  %v669_v61 = vld [vmem:[#allocation8 + $0x18] sm:$0xff]  }
  0x3f   :  { %586 = vmatprep.subr.bf16.mxu0 %v799_v0  ;;  %v544_v16 = vld [vmem:[%s949_s10] ss:$0 sm:$0xff] }
  0x41   :  { %605 = vmatpush3.bf16.msra.mxu1 %v659_v25 }
  0x42   :  { %587 = vmatpush3.bf16.msra.mxu0 %v652_v4  ;;  %606 = vmatprep.subr.bf16.mxu1 %v799_v0 }
  0x43   :  { %588 = vmatprep.subr.bf16.mxu0 %v799_v0 }
  0x45   :  { %607 = vmatpush3.bf16.msra.mxu1 %v660_v26 }
  0x46   :  { %589 = vmatpush3.bf16.msra.mxu0 %v653_v5  ;;  %608 = vmatprep.subr.bf16.mxu1 %v799_v0 }
  0x47   :  { %590 = vmatprep.subr.bf16.mxu0 %v799_v0 }
  0x49   :  { %609 = vmatpush3.bf16.msra.mxu1 %v661_v27 }
  0x4a   :  { %591 = vmatpush3.bf16.msra.mxu0 %v654_v6  ;;  %610 = vmatprep.subr.bf16.mxu1 %v799_v0  ;;  %v541_v6 = vld [vmem:[%s946_s7] ss:$0 sm:$0xff]  ;;  %s801_s7 = smov [#allocation10]  }
  0x4b   :  { %592 = vmatprep.subr.bf16.mxu0 %v799_v0  ;;  %s509_s26 = sshll.u32 %s801_s7, 4  ;;  %s510_s26 = int_to_ptr.vmem [resolvable:$true] %s509_s26 }
  0x4c   :  { %p770_p7 = scmp.lt.s32.totalorder %s510_s26, %s510_s26 }
  0x4d   :  { %611 = vmatpush3.bf16.msra.mxu1 %v662_v28 }
  0x4e   :  { %593 = vmatpush3.bf16.msra.mxu0 %v655_v7  ;;  %612 = vmatprep.subr.bf16.mxu1 %v799_v0 }
  0x4f   :  { %594 = vmatprep.subr.bf16.mxu0 %v799_v0 }
  0x51   :  { %613 = vmatpush3.bf16.msra.mxu1 %v663_v29 }
  0x52   :  { %595 = vmatpush3.bf16.msra.mxu0 %v656_v8  ;;  %614 = vmatprep.subr.bf16.mxu1 %v799_v0  ;;  %v542_v8 = vld [vmem:[%s947_s8] ss:$0 sm:$0xff]  ;;  %s765_s8 = scalar_lea.vmem %s510_s26, 128 }
  0x53   :  { %620 = vmatprep.subr.bf16.mxu0 %v799_v0  ;;  %p766_p6 = scmp.ne.s32.totalorder %s510_s26, %s765_s8  ;;  %p771_p8 = scmp.lt.s32.totalorder %s765_s8, %s765_s8 }
  0x55   :  { %597 = vmatmul.mubr.bf16.vlgmr.msra.gmra.mxu0 %v93_v9  ;;  %615 = vmatpush3.bf16.msra.mxu1 %v664_v30  ;;  %p772_p9 = por %p771_p8, %p770_p7 }
  0x56   :  { %636 = vmatprep.mubr.msk.bf16.mxu0 %vm800_vm0, %v799_v0  ;;  %621 = vmatpush3.bf16.msra.mxu0 %v665_v57 }
  0x57   :  { %622 = vmatprep.subr.bf16.mxu0 %v799_v0  ;;  %p773_p10 = pnand %p772_p9, %p766_p6 }
  0x5a   :  { %623 = vmatpush3.bf16.msra.mxu0 %v666_v58 }
  0x5b   :  { %624 = vmatprep.subr.bf16.mxu0 %v799_v0 }
  0x5e   :  { %625 = vmatpush3.bf16.msra.mxu0 %v667_v59 }
  0x5f   :  { %626 = vmatprep.subr.bf16.mxu0 %v799_v0 }
  0x62   :  { %627 = vmatpush3.bf16.msra.mxu0 %v668_v60 }
  0x63   :  { %628 = vmatprep.subr.bf16.mxu0 %v799_v0 }
  0x66   :  { %629 = vmatpush3.bf16.msra.mxu0 %v669_v61 }
  0x67   :  { %630 = vmatprep.subr.bf16.mxu0 %v799_v0 }
  0x6a   :  { %631 = vmatpush3.bf16.msra.mxu0 %v670_v62 }
  0x6b   :  { %632 = vmatprep.subr.bf16.mxu0 %v799_v0 }
  0x6e   :  { %633 = vmatpush3.bf16.msra.mxu0 %v671_v63 }
  0x6f   :  { %634 = vmatprep.subr.bf16.mxu0 %v799_v0 }
  0x72   :  { %635 = vmatpush3.bf16.msra.mxu0 %v672_v1 }
 0x115   :  { %v199_v11 = vpop.f32.mrf.mxu0 }
 0x116   :  { %v200_v12 = vadd.f32 %v520_v10, %v199_v11 }
 0x117   :  { %v598_v13 = vpop.f32.mrf.mxu0 }
 0x118   :  { %210 = vadd.xlane.f32.xlu0 %v200_v12 }
 0x119   :  { %v202_v14 = vpop.f32.mrf.mxu0 }
 0x11b   :  { %v599_v15 = vpop.f32.mrf.mxu0 }
 0x1a1   :  { %v211_v18 = vpop.xlane.xlu0 %210 }
 0x1a2   :  { %v212_v19 = vmul.f32 0.03125, %v211_v18 }
 0x1a4   :  { %v213_v20 = vsub.f32 %v200_v12, %v212_v19 }
 0x1a6   :  { %v214_v21 = vsel %vm209_vm1, %v213_v20, 0.0 }
 0x1a7   :  { %v215_v22 = vmul.f32 %v214_v21, %v214_v21 }
 0x1a9   :  { %216 = vadd.xlane.f32.xlu0 %v215_v22 }
 0x232   :  { %v217_v31 = vpop.xlane.xlu0 %216 }
 0x233   :  { %v218_v32 = vmul.f32 0.03125, %v217_v31 }
 0x235   :  { %v219_v33 = vadd.f32 1e-05, %v218_v32 }
 0x237   :  { %673 = vrsqrt.f32 %v219_v33 }
 0x244   :  { %v674_v34 = vpop.eup %673 }
 0x245   :  { %v221_v36 = vmul.f32 %v674_v34, %v213_v20 }
 0x247   :  { %v228_v38 = vmul.f32 %v529_v35, %v221_v36 }
 0x249   :  { %v235_v39 = vadd.f32 %v530_v37, %v228_v38 }
 0x24b   :  { %v531_v40 = vmul.f32 -1.442695, %v235_v39 }
 0x24d   :  { %675 = vpow2.f32 %v531_v40 }
 0x25a   :  { %v676_v41 = vpop.eup %675 }
 0x25b   :  { %v239_v42 = vadd.f32 1.0, %v676_v41 }
 0x25d   :  { %677 = vrcp.f32 %v239_v42 }
 0x26a   :  { %v678_v43 = vpop.eup %677 }
 0x26b   :  { %v242_v44 = vmul.f32 %v678_v43, %v235_v39 }
 0x26d   :  { %v243_v45 = vpack.c.bf16 %v242_v44, %v242_v44 }
 0x26f   :  { %617 = vmatmul.mubr.bf16.vlgmr.msra.gmra.mxu1 %v243_v45 }
 0x32f   :  { %v349_v47 = vpop.f32.mrf.mxu1 }
 0x330   :  { %v350_v48 = vadd.f32 %v532_v46, %v349_v47 }
 0x331   :  { %v618_v49 = vpop.f32.mrf.mxu1 }
 0x332   :  { %357 = vadd.xlane.f32.xlu1 %v350_v48 }
 0x333   :  { %v352_v50 = vpop.f32.mrf.mxu1 }
 0x335   :  { %v619_v51 = vpop.f32.mrf.mxu1 }
 0x3bb   :  { %v358_v52 = vpop.xlane.xlu1 %357 }
 0x3bc   :  { %v359_v53 = vmul.f32 0.03125, %v358_v52 }
 0x3be   :  { %v360_v54 = vsub.f32 %v350_v48, %v359_v53 }
 0x3c0   :  { %v361_v55 = vsel %vm209_vm1, %v360_v54, 0.0 }
 0x3c1   :  { %v362_v56 = vmul.f32 %v361_v55, %v361_v55 }
 0x3c3   :  { %363 = vadd.xlane.f32.xlu1 %v362_v56 }
 0x44c   :  { %v364_v2 = vpop.xlane.xlu1 %363 }
 0x44d   :  { %v365_v3 = vmul.f32 0.03125, %v364_v2 }
 0x44f   :  { %v366_v4 = vadd.f32 1e-05, %v365_v3 }
 0x451   :  { %679 = vrsqrt.f32 %v366_v4 }
 0x45e   :  { %v680_v5 = vpop.eup %679 }
 0x45f   :  { %v368_v7 = vmul.f32 %v680_v5, %v360_v54 }
 0x461   :  { %v375_v9 = vmul.f32 %v541_v6, %v368_v7 }
 0x463   :  { %v382_v10 = vadd.f32 %v542_v8, %v375_v9 }
 0x465   :  { %v543_v11 = vmul.f32 -1.442695, %v382_v10 }
 0x467   :  { %681 = vpow2.f32 %v543_v11 }
 0x474   :  { %v682_v0 = vpop.eup %681 }
 0x475   :  { %v386_v12 = vadd.f32 1.0, %v682_v0 }
 0x477   :  { %683 = vrcp.f32 %v386_v12 }
 0x484   :  { %v684_v13 = vpop.eup %683 }
 0x485   :  { %v389_v14 = vmul.f32 %v684_v13, %v382_v10 }
 0x487   :  { %v390_v15 = vpack.c.bf16 %v389_v14, %v389_v14 }
 0x489   :  { %637 = vmatmul.mubr.bf16.vlgmr.msra.gmra.mxu0 %v390_v15 }
 0x549   :  { %v496_v17 = vpop.f32.mrf.mxu0 }
 0x54a   :  { %v497_v18 = vadd.f32 %v544_v16, %v496_v17 }
 0x54b   :  { %v638_v19 = vpop.f32.mrf.mxu0 }
 0x54c   :  { %502 = vst [vmem:[#allocation10] sm:$0xff] %v497_v18 }
 0x54d   :  { %v499_v20 = vpop.f32.mrf.mxu0 }
 0x54e   :  { %776 = shalt.err (!%p773_p10)
}
 0x54f   :  { %512 = dma.vmem_to_hbm [thread:$0]  %s510_s26, 128, %s950_s11, [#allocation4]   ;;  %v639_v21 = vpop.f32.mrf.mxu0 }
 0x550   :  { %791 = dma.done.wait [#allocation4], 128  }
 0x551   :  { %792 = vsyncadd [#allocation4], 4294967168 }
 0x552   :  { %516 = vsyncpa [#allocation3], 1 }
 0x553   :  { %517 = vsyncpa [#allocation6], 1 }
 0x554   :  { %518 = vsyncpa [#allocation9], 1 }
 0x555   :  { %519 = vsyncpa [#allocation4], 1 }

</bundles_post_ra>
